<compile_context>
chip_gen: v7x
topology: tpu7x:2x2x1
jax: 0.10.0
libtpu: 0.0.40
codegen_flags: <defaults>
</compile_context>

<pallas_src>
import functools

import jax
import jax.numpy as jnp
from jax import lax
from jax.experimental import pallas as pl
from jax.experimental.pallas import tpu as pltpu

TEMPERATURE = 4.0


def _sp_kernel(feat_ref, feas_ref, out_ref, sim_t_acc, sim_s_acc, *, tb, inv_temp):
    i = pl.program_id(0)          # row-strip index
    k = pl.program_id(1)          # feature (contraction) tile index
    nk = pl.num_programs(1)

    @pl.when(jnp.logical_and(i == 0, k == 0))
    def _init_out():
        out_ref[...] = jnp.zeros_like(out_ref)

    @pl.when(k == 0)
    def _init_acc():
        sim_t_acc[...] = jnp.zeros_like(sim_t_acc)
        sim_s_acc[...] = jnp.zeros_like(sim_s_acc)

    # Full [B, tk] tile is resident; slice the row strip out of it instead of
    # DMA-ing the same rows twice.
    row0 = pl.multiple_of(i * tb, tb)
    ft_full = feat_ref[...]                       # [B, tk], input dtype
    fs_full = feas_ref[...]                       # [B, tk], input dtype
    ft_strip = feat_ref[pl.ds(row0, tb), :]       # [tb, tk]
    fs_strip = feas_ref[pl.ds(row0, tb), :]       # [tb, tk]

    # Contract the feature axis of both operands directly (no explicit .T).
    dn = (((1,), (1,)), ((), ()))
    sim_t_acc[...] += lax.dot_general(ft_strip, ft_full, dimension_numbers=dn,
                                      preferred_element_type=jnp.float32)
    sim_s_acc[...] += lax.dot_general(fs_strip, fs_full, dimension_numbers=dn,
                                      preferred_element_type=jnp.float32)

    @pl.when(k == nk - 1)
    def _finalize():
        zt = sim_t_acc[...] * inv_temp            # [tb, B] f32
        zs = sim_s_acc[...] * inv_temp

        # Teacher: softmax + log-softmax (numerically stable, f32 on EUP).
        zt_max = jnp.max(zt, axis=1, keepdims=True)
        et = jnp.exp(zt - zt_max)
        et_sum = jnp.sum(et, axis=1, keepdims=True)
        log_p_t = (zt - zt_max) - jnp.log(et_sum)
        p_t = et * pl.reciprocal(et_sum, approx=False)

        # Student: log-softmax.
        zs_max = jnp.max(zs, axis=1, keepdims=True)
        es = jnp.exp(zs - zs_max)
        es_sum = jnp.sum(es, axis=1, keepdims=True)
        log_p_s = (zs - zs_max) - jnp.log(es_sum)

        # kl_div(input=log_p_s, target=p_t, reduction='sum') for this row strip.
        partial = jnp.sum(p_t * (log_p_t - log_p_s))
        out_ref[...] += jnp.reshape(partial, (1, 1))


def _pick_tile(dim, candidates):
    for c in candidates:
        if dim % c == 0:
            return c
    return dim


def similarity_preserving_loss(fea_t, fea_s, *, tb=None, tk=None,
                               temperature=TEMPERATURE):
    """fea_t, fea_s: [B, D] (or [B, ...] which is flattened). Returns f32 scalar."""
    if fea_t.ndim > 2:
        fea_t = fea_t.reshape(fea_t.shape[0], -1)
    if fea_s.ndim > 2:
        fea_s = fea_s.reshape(fea_s.shape[0], -1)
    assert fea_t.shape == fea_s.shape and fea_t.ndim == 2
    B, D = fea_t.shape

    if tb is None:
        tb = _pick_tile(B, (128, 64, 32, 16, 8))
    if tk is None:
        tk = _pick_tile(D, (512, 256, 128))
    assert B % tb == 0 and D % tk == 0, (B, D, tb, tk)
    grid = (B // tb, D // tk)

    kernel = functools.partial(_sp_kernel, tb=tb, inv_temp=1.0 / temperature)
    itemsize = jnp.dtype(fea_t.dtype).itemsize

    kl_sum = pl.pallas_call(
        kernel,
        out_shape=jax.ShapeDtypeStruct((1, 1), jnp.float32),
        grid_spec=pltpu.PrefetchScalarGridSpec(
            num_scalar_prefetch=0,
            grid=grid,
            in_specs=[
                pl.BlockSpec((B, tk), lambda i, k: (0, k)),   # teacher K tile
                pl.BlockSpec((B, tk), lambda i, k: (0, k)),   # student K tile
            ],
            out_specs=pl.BlockSpec((1, 1), lambda i, k: (0, 0)),
            scratch_shapes=[
                pltpu.VMEM((tb, B), jnp.float32),             # Sim_T strip acc
                pltpu.VMEM((tb, B), jnp.float32),             # Sim_S strip acc
            ],
        ),
        compiler_params=pltpu.CompilerParams(
            # Both axes "arbitrary": the scalar output accumulates across the
            # row-strip axis, so it must run sequentially (safe on all chips).
            dimension_semantics=("arbitrary", "arbitrary"),
            vmem_limit_bytes=48 * 1024 * 1024,
        ),
        cost_estimate=pl.CostEstimate(
            flops=4 * B * B * D,
            transcendentals=4 * B * B,
            bytes_accessed=2 * B * D * itemsize + 2 * B * B * 4,
        ),
    )(fea_t, fea_s)

    return kl_sum[0, 0] * (temperature * temperature) / B


def _reference_loss(fea_t, fea_s, temperature=TEMPERATURE):
    t = temperature
    sim_t = (fea_t.astype(jnp.float32) @ fea_t.astype(jnp.float32).T)
    sim_s = (fea_s.astype(jnp.float32) @ fea_s.astype(jnp.float32).T)
    p_t = jax.nn.softmax(sim_t / t, axis=1)
    log_p_t = jax.nn.log_softmax(sim_t / t, axis=1)
    log_p_s = jax.nn.log_softmax(sim_s / t, axis=1)
    kl = jnp.sum(p_t * (log_p_t - log_p_s))
    return kl * (t * t) / sim_s.shape[0]


if __name__ == "__main__":
    key = jax.random.PRNGKey(0)
    k1, k2 = jax.random.split(key)
    B, D = 16, 384  # small test: batch=16 feature vectors of dim 384
    fea_t = jax.random.normal(k1, (B, D), dtype=jnp.float32) * 0.1
    fea_s = jax.random.normal(k2, (B, D), dtype=jnp.float32) * 0.1

    ref = _reference_loss(fea_t, fea_s)

    # Tiled path: 2 row strips x 3 feature tiles (exercises init/accumulate/finalize).
    loss_tiled = similarity_preserving_loss(fea_t, fea_s, tb=8, tk=128)
    jax.block_until_ready(loss_tiled)
    assert jnp.allclose(loss_tiled, ref, rtol=1e-4, atol=1e-5), (loss_tiled, ref)

    # Default tile-picker path (degenerates to a single block at this size).
    loss_default = similarity_preserving_loss(fea_t, fea_s)
    jax.block_until_ready(loss_default)
    assert jnp.allclose(loss_default, ref, rtol=1e-4, atol=1e-5), (loss_default, ref)

    print("KERNEL_OK")
</pallas_src>

<mosaic_0001>
module attributes {stable_mosaic.version = 11 : i64} {
  func.func @_sp_kernel(%arg0: i32, %arg1: i32, %arg2: memref<16x128xf32, #tpu.memory_space<vmem>>, %arg3: memref<16x128xf32, #tpu.memory_space<vmem>>, %arg4: memref<1x1xf32, #tpu.memory_space<vmem>>, %arg5: memref<8x16xf32, #tpu.memory_space<vmem>>, %arg6: memref<8x16xf32, #tpu.memory_space<vmem>>) attributes {dimension_semantics = [#tpu.dimension_semantics<arbitrary>, #tpu.dimension_semantics<arbitrary>], iteration_bounds = array<i64: 2, 3>, scalar_prefetch = 0 : i64, scratch_operands = 2 : i64, tpu.core_type = #tpu.core_type<tc>, window_params = [{transform_indices = @transform_0, window_bounds = array<i64: 16, 128>}, {transform_indices = @transform_1, window_bounds = array<i64: 16, 128>}, {pipeline_mode = #tpu.pipeline_mode<synchronous>, transform_indices = @transform_2, window_bounds = array<i64: 1, 1>}]} {
    %c0_i32 = arith.constant 0 : i32
    %0 = arith.cmpi eq, %arg0, %c0_i32 : i32
    %c0_i32_0 = arith.constant 0 : i32
    %1 = arith.cmpi eq, %arg1, %c0_i32_0 : i32
    %2 = arith.andi %0, %1 : i1
    %3 = arith.extui %2 : i1 to i32
    %c0_i32_1 = arith.constant 0 : i32
    %4 = arith.cmpi ne, %3, %c0_i32_1 : i32
    scf.if %4 {
      %cst_19 = arith.constant 0.000000e+00 : f32
      %27 = vector.broadcast %cst_19 : f32 to vector<1x1xf32>
      %c0_20 = arith.constant 0 : index
      %c0_21 = arith.constant 0 : index
      %28 = vector.load %arg4[%c0_20, %c0_21] : memref<1x1xf32, #tpu.memory_space<vmem>>, vector<1x1xf32>
      tpu.vector_store %arg4[%c0_20, %c0_21], %27 {strides = array<i32>} : memref<1x1xf32, #tpu.memory_space<vmem>>, vector<1x1xf32>,
    } else {
    }
    %c0_i32_2 = arith.constant 0 : i32
    %5 = arith.cmpi eq, %arg1, %c0_i32_2 : i32
    %6 = arith.extui %5 : i1 to i32
    %c0_i32_3 = arith.constant 0 : i32
    %7 = arith.cmpi ne, %6, %c0_i32_3 : i32
    scf.if %7 {
      %cst_19 = arith.constant 0.000000e+00 : f32
      %27 = vector.broadcast %cst_19 : f32 to vector<8x16xf32>
      %c0_20 = arith.constant 0 : index
      %c0_21 = arith.constant 0 : index
      %28 = vector.load %arg5[%c0_20, %c0_21] : memref<8x16xf32, #tpu.memory_space<vmem>>, vector<8x16xf32>
      tpu.vector_store %arg5[%c0_20, %c0_21], %27 {strides = array<i32>} : memref<8x16xf32, #tpu.memory_space<vmem>>, vector<8x16xf32>,
      %cst_22 = arith.constant 0.000000e+00 : f32
      %29 = vector.broadcast %cst_22 : f32 to vector<8x16xf32>
      %c0_23 = arith.constant 0 : index
      %c0_24 = arith.constant 0 : index
      %30 = vector.load %arg6[%c0_23, %c0_24] : memref<8x16xf32, #tpu.memory_space<vmem>>, vector<8x16xf32>
      tpu.vector_store %arg6[%c0_23, %c0_24], %29 {strides = array<i32>} : memref<8x16xf32, #tpu.memory_space<vmem>>, vector<8x16xf32>,
    } else {
    }
    %c8_i32 = arith.constant 8 : i32
    %8 = arith.muli %arg0, %c8_i32 : i32
    %9 = tpu.assume_multiple %8, 8 : i32
    %c0 = arith.constant 0 : index
    %c0_4 = arith.constant 0 : index
    %10 = vector.load %arg2[%c0, %c0_4] : memref<16x128xf32, #tpu.memory_space<vmem>>, vector<16x128xf32>
    %c0_5 = arith.constant 0 : index
    %c0_6 = arith.constant 0 : index
    %11 = vector.load %arg3[%c0_5, %c0_6] : memref<16x128xf32, #tpu.memory_space<vmem>>, vector<16x128xf32>
    %12 = arith.index_cast %9 : i32 to index
    %c0_7 = arith.constant 0 : index
    %13 = vector.load %arg2[%12, %c0_7] : memref<16x128xf32, #tpu.memory_space<vmem>>, vector<8x128xf32>
    %14 = arith.index_cast %9 : i32 to index
    %c0_8 = arith.constant 0 : index
    %15 = vector.load %arg3[%14, %c0_8] : memref<16x128xf32, #tpu.memory_space<vmem>>, vector<8x128xf32>
    %c0_9 = arith.constant 0 : index
    %c0_10 = arith.constant 0 : index
    %16 = vector.load %arg5[%c0_9, %c0_10] : memref<8x16xf32, #tpu.memory_space<vmem>>, vector<8x16xf32>
    %cst = arith.constant dense<0.000000e+00> : vector<8x16xf32>
    %17 = tpu.matmul %13, %10, %cst {dimension_numbers = #tpu.dot_dimension_numbers<[1], [1], [0], [0], [0, 0, 1, 0], [], []>} : vector<8x128xf32>, vector<16x128xf32>, vector<8x16xf32> -> vector<8x16xf32>
    %18 = arith.addf %16, %17 : vector<8x16xf32>
    %c0_11 = arith.constant 0 : index
    %c0_12 = arith.constant 0 : index
    %19 = vector.load %arg5[%c0_11, %c0_12] : memref<8x16xf32, #tpu.memory_space<vmem>>, vector<8x16xf32>
    tpu.vector_store %arg5[%c0_11, %c0_12], %18 {strides = array<i32>} : memref<8x16xf32, #tpu.memory_space<vmem>>, vector<8x16xf32>,
    %c0_13 = arith.constant 0 : index
    %c0_14 = arith.constant 0 : index
    %20 = vector.load %arg6[%c0_13, %c0_14] : memref<8x16xf32, #tpu.memory_space<vmem>>, vector<8x16xf32>
    %cst_15 = arith.constant dense<0.000000e+00> : vector<8x16xf32>
    %21 = tpu.matmul %15, %11, %cst_15 {dimension_numbers = #tpu.dot_dimension_numbers<[1], [1], [0], [0], [0, 0, 1, 0], [], []>} : vector<8x128xf32>, vector<16x128xf32>, vector<8x16xf32> -> vector<8x16xf32>
    %22 = arith.addf %20, %21 : vector<8x16xf32>
    %c0_16 = arith.constant 0 : index
    %c0_17 = arith.constant 0 : index
    %23 = vector.load %arg6[%c0_16, %c0_17] : memref<8x16xf32, #tpu.memory_space<vmem>>, vector<8x16xf32>
    tpu.vector_store %arg6[%c0_16, %c0_17], %22 {strides = array<i32>} : memref<8x16xf32, #tpu.memory_space<vmem>>, vector<8x16xf32>,
    %c2_i32 = arith.constant 2 : i32
    %24 = arith.cmpi eq, %arg1, %c2_i32 : i32
    %25 = arith.extui %24 : i1 to i32
    %c0_i32_18 = arith.constant 0 : i32
    %26 = arith.cmpi ne, %25, %c0_i32_18 : i32
    scf.if %26 {
      %c0_19 = arith.constant 0 : index
      %c0_20 = arith.constant 0 : index
      %27 = vector.load %arg5[%c0_19, %c0_20] : memref<8x16xf32, #tpu.memory_space<vmem>>, vector<8x16xf32>
      %cst_21 = arith.constant 2.500000e-01 : f32
      %28 = vector.broadcast %cst_21 : f32 to vector<8x16xf32>
      %29 = arith.mulf %27, %28 : vector<8x16xf32>
      %c0_22 = arith.constant 0 : index
      %c0_23 = arith.constant 0 : index
      %30 = vector.load %arg6[%c0_22, %c0_23] : memref<8x16xf32, #tpu.memory_space<vmem>>, vector<8x16xf32>
      %cst_24 = arith.constant 2.500000e-01 : f32
      %31 = vector.broadcast %cst_24 : f32 to vector<8x16xf32>
      %32 = arith.mulf %30, %31 : vector<8x16xf32>
      %cst_25 = arith.constant dense<0xFF800000> : vector<8xf32>
      %33 = vector.multi_reduction <maximumf>, %29, %cst_25 [1] : vector<8x16xf32> to vector<8xf32>
      %34 = vector.shape_cast %33 : vector<8xf32> to vector<8x1xf32>
      %35 = vector.broadcast %34 : vector<8x1xf32> to vector<8x16xf32>
      %36 = arith.subf %29, %35 : vector<8x16xf32>
      %37 = math.exp %36 : vector<8x16xf32>
      %cst_26 = arith.constant dense<0.000000e+00> : vector<8xf32>
      %38 = vector.multi_reduction <add>, %37, %cst_26 [1] : vector<8x16xf32> to vector<8xf32>
      %39 = vector.shape_cast %38 : vector<8xf32> to vector<8x1xf32>
      %40 = vector.broadcast %34 : vector<8x1xf32> to vector<8x16xf32>
      %41 = arith.subf %29, %40 : vector<8x16xf32>
      %42 = math.log %39 : vector<8x1xf32>
      %43 = vector.broadcast %42 : vector<8x1xf32> to vector<8x16xf32>
      %44 = arith.subf %41, %43 : vector<8x16xf32>
      %45 = tpu.reciprocal %39 : vector<8x1xf32> -> vector<8x1xf32>
      %46 = vector.broadcast %45 : vector<8x1xf32> to vector<8x16xf32>
      %47 = arith.mulf %37, %46 : vector<8x16xf32>
      %cst_27 = arith.constant dense<0xFF800000> : vector<8xf32>
      %48 = vector.multi_reduction <maximumf>, %32, %cst_27 [1] : vector<8x16xf32> to vector<8xf32>
      %49 = vector.shape_cast %48 : vector<8xf32> to vector<8x1xf32>
      %50 = vector.broadcast %49 : vector<8x1xf32> to vector<8x16xf32>
      %51 = arith.subf %32, %50 : vector<8x16xf32>
      %52 = math.exp %51 : vector<8x16xf32>
      %cst_28 = arith.constant dense<0.000000e+00> : vector<8xf32>
      %53 = vector.multi_reduction <add>, %52, %cst_28 [1] : vector<8x16xf32> to vector<8xf32>
      %54 = vector.shape_cast %53 : vector<8xf32> to vector<8x1xf32>
      %55 = vector.broadcast %49 : vector<8x1xf32> to vector<8x16xf32>
      %56 = arith.subf %32, %55 : vector<8x16xf32>
      %57 = math.log %54 : vector<8x1xf32>
      %58 = vector.broadcast %57 : vector<8x1xf32> to vector<8x16xf32>
      %59 = arith.subf %56, %58 : vector<8x16xf32>
      %60 = arith.subf %44, %59 : vector<8x16xf32>
      %61 = arith.mulf %47, %60 : vector<8x16xf32>
      %62 = vector.shape_cast %61 : vector<8x16xf32> to vector<1x8x16xf32>
      %cst_29 = arith.constant dense<0.000000e+00> : vector<1xf32>
      %63 = vector.multi_reduction <add>, %62, %cst_29 [1, 2] : vector<1x8x16xf32> to vector<1xf32>
      %64 = vector.shape_cast %63 : vector<1xf32> to vector<1x1x1xf32>
      %65 = vector.extract %64[0, 0, 0] : f32 from vector<1x1x1xf32>
      %c0_30 = arith.constant 0 : index
      %c0_31 = arith.constant 0 : index
      %66 = vector.load %arg4[%c0_30, %c0_31] : memref<1x1xf32, #tpu.memory_space<vmem>>, vector<1x1xf32>
      %67 = vector.broadcast %65 : f32 to vector<1x1xf32>
      %68 = arith.addf %66, %67 : vector<1x1xf32>
      %c0_32 = arith.constant 0 : index
      %c0_33 = arith.constant 0 : index
      %69 = vector.load %arg4[%c0_32, %c0_33] : memref<1x1xf32, #tpu.memory_space<vmem>>, vector<1x1xf32>
      tpu.vector_store %arg4[%c0_32, %c0_33], %68 {strides = array<i32>} : memref<1x1xf32, #tpu.memory_space<vmem>>, vector<1x1xf32>,
    } else {
    }
    return
  }
  func.func @transform_0(%arg0: i32, %arg1: i32) -> (i32, i32) {
    %c0_i32 = arith.constant 0 : i32
    %c0_i32_0 = arith.constant 0 : i32
    return %c0_i32, %arg1 : i32, i32
  }
  func.func @transform_1(%arg0: i32, %arg1: i32) -> (i32, i32) {
    %c0_i32 = arith.constant 0 : i32
    %c0_i32_0 = arith.constant 0 : i32
    return %c0_i32, %arg1 : i32, i32
  }
  func.func @transform_2(%arg0: i32, %arg1: i32) -> (i32, i32) {
    %c0_i32 = arith.constant 0 : i32
    %c0_i32_0 = arith.constant 0 : i32
    %c0_i32_1 = arith.constant 0 : i32
    return %c0_i32, %c0_i32_0 : i32, i32
  }
}

</mosaic_0001>

<bundles_post_ra>
// kernel: tpu_custom_call.1
= control target key start
LH: loop header
LB: loop body
LE: loop exit
PB: predicated region body
PF: predicated region fallthrough
CT: control target
= control target key end

     0   :  { %7 = vsyncpa [#allocation5], 0  ;;  %s1104_s0 = inlined_call_operand.hbm [shape: f32[16,384], index: 0, kind: input, shape index: {}]   ;;  %s1105_s1 = inlined_call_operand.hbm [shape: f32[16,384], index: 1, kind: input, shape index: {}]   ;;  %s1106_s2 = inlined_call_operand.hbm [shape: f32[1,1], index: 2, kind: output, shape index: {}]  }
   0x1   :  { %9 = vsyncpa [#allocation5 + $0x1], 0 }
   0x2   :  { %10 = vsyncpa [#allocation8], 0 }
   0x3   :  { %12 = vsyncpa [#allocation8 + $0x1], 0 }
   0x4   :  { %13 = vsyncpa [#allocation6], 0  ;;  %s851_s9 = smov 0   ;;  %s853_s10 = smov 0  }
   0x5   :  { %s855_s11 = smov 0   ;;  %s857_s12 = smov 0  }
   0x6   :  { %s859_s13 = smov 0   ;;  %s861_s14 = smov 0  }
   0x7   :  { %s863_s15 = smov 0   ;;  %s865_s16 = smov 0  }
   0x8 LB: > { %s1107_s17 = sadd.s32 4294967295, %s823_s16   ;;  %s28_s18 = sadd.s32 1, %s815_s14  ;;  %s823_s16 = sphi %s865_s16, %s19_s16   ;;  %s819_s15 = sphi %s863_s15, %s1123_s15   ;;  %s815_s14 = sphi %s861_s14, %s1122_s14   ;;  %s811_s13 = sphi %s859_s13, %s1121_s13   ;;  %s807_s12 = sphi %s857_s12, %s1120_s12   ;;  %s803_s11 = sphi %s855_s11, %s1119_s11   ;;  %s799_s10 = sphi %s853_s10, %s1118_s10   ;;  %s795_s9 = sphi %s851_s9, %s1117_s9  }
   0x9   : > { %p29_p0 = scmp.ge.s32.totalorder %s28_s18, 3  ;;  %s31_s19 = sadd.s32 1, %s819_s15 }
   0xa   : > { %s38_s20 = sadd.s32 1, %s803_s11  ;;  %p45_p1 = scmp.ne.s32.totalorder %s803_s11, %s799_s10 }
   0xb   : > { %s1125_s18 = smov (%p29_p0, %s28_s18), 0  ;;  %s1127_s19 = smov (!%p29_p0, %s31_s19), %s819_s15 }
   0xc   : > { %s35_s21 = ssub.s32 %s815_s14, %s1125_s18  ;;  %p46_p2 = scmp.eq.s32.totalorder %s823_s16, 0 }
   0xd   : > { %p33_p3 = scmp.ge.s32.totalorder %s1127_s19, 2  ;;  %p36_p4 = scmp.eq.s32.totalorder %s35_s21, 0 }
   0xe   : > { %p901_p5 = por %p46_p2, %p45_p1  ;;  %p51_p6 = scmp.ne.s32.totalorder %s799_s10, %s795_s9 }
   0xf   : > { %s1129_s19 = smov (%p33_p3, %s1127_s19), 0  ;;  %p52_p7 = scmp.eq.s32.totalorder %s1107_s17, 0 }
  0x10   : > { %s909_s23 = scalar_select %p36_p4, %s803_s11, %s38_s20  }
  0x11   : > { %p577_p8 = scmp.lt.s32.totalorder %s823_s16, 6  ;;  %s915_s24 = sand.u32 1, %s803_s11  }
  0x12   : > { %p917_p9 = por %p52_p7, %p51_p6  ;;  %s520_s26 = sshll.u32 %s915_s24, 4 }
  0x13   : > { %s521_s27 = sshll.u32 %s815_s14, 7  ;;  %s126_s3 = scalar_lea.vmem [#allocation4], %s520_s26 }
  0x14   : > { %s1110_s25 = scalar_select %p917_p9, 1, 0 }
  0x15   : > { %s928_s30 = scalar_lea.hbm %s1104_s0, %s521_s27  ;;  %s132_s4 = sshll.u32 %s126_s3, 4  ;;  %s938_s4 = int_to_ptr.vmem [resolvable:$true] %s132_s4 }
  0x16   : > { %p934_p10 = pnand %p577_p8, %p901_p5  ;;  %s123_s6 = scalar_lea.sflag [#allocation5], %s915_s24 }
  0x17   : > { %s663_s7 = scalar_lea.hbm %s928_s30, 256  ;;  %s668_s20 = scalar_lea.hbm %s1104_s0, 768 }
  0x18   : > { %p664_p12 = scmp.ne.s32.totalorder %s928_s30, %s663_s7  ;;  %p665_p13 = pneg %p934_p10 }
  0x19   : > { %p669_p2 = scmp.lt.u32.totalorder %s928_s30, %s1104_s0  ;;  %p670_p3 = scmp.lt.u32.totalorder %s668_s20, %s663_s7 }
  0x1a   : > { %p666_p0 = pnand %p665_p13, %p664_p12  ;;  %p672_p5 = scmp.lt.u32.totalorder %s663_s7, %s928_s30 }
  0x1b   : > { %p671_p4 = por %p670_p3, %p669_p2 }
  0x1c   : > { %p667_p1 = pneg %p666_p0 }
  0x1d   : > { %p673_p6 = por %p672_p5, %p671_p4 }
  0x1f   : > { %p674_p7 = pnand %p673_p6, %p667_p1 }
  0x21   : > { %677 = shalt.err (!%p674_p7)
}
  0x22   : > { %s678_s28 = scalar_lea.vmem %s938_s4, 256  ;;  %s825_s29 = smov [#allocation4]  }
  0x23   : > { %p679_p8 = scmp.ne.s32.totalorder %s938_s4, %s678_s28  ;;  %s683_s3 = sshll.u32 %s825_s29, 4  ;;  %s684_s3 = int_to_ptr.vmem [resolvable:$false] %s683_s3 }
  0x24   : > { %s685_s8 = scalar_lea.vmem %s684_s3, 512  ;;  %p686_p11 = scmp.lt.s32.totalorder %s938_s4, %s684_s3 }
  0x25   : > { %p681_p12 = pnand %p679_p8, %p665_p13  ;;  %p687_p2 = scmp.lt.s32.totalorder %s685_s8, %s678_s28 }
  0x27   : > { %p682_p0 = pneg %p681_p12  ;;  %p688_p3 = por %p687_p2, %p686_p11 }
  0x29   : > { %p689_p4 = pnand %p688_p3, %p682_p0 }
  0x2b   : > { %692 = shalt.err (!%p689_p4)
}
  0x2c   : > { %s826_s7 = smov 384   ;;  %s827_s9 = smov 128  }
  0x2d   : > { %s828_s20 = smov 8   ;;  %p160_p11 = scmp.lt.s32.totalorder %s823_s16, 7 }
  0x2e   : > { %573 = dma.hbm_to_vmem [thread:$0]  (!%p934_p10), %s928_s30, 256, %s938_s4, %s123_s6, %s826_s7, %s827_s9, %s828_s20  }
  0x2f   : > { %s978_s28 = scalar_lea.hbm %s1105_s1, %s521_s27  ;;  %p1112_p1 = scmp.ge.s32.totalorder %s823_s16, 1 }
  0x30   : > { %s146_s3 = scalar_lea.vmem [#allocation7], %s520_s26  ;;  %s143_s30 = scalar_lea.sflag [#allocation8], %s915_s24 }
  0x31   : > { %p982_p5 = pnand %p1112_p1, %p160_p11  ;;  %s152_s8 = sshll.u32 %s146_s3, 4  ;;  %s988_s8 = int_to_ptr.vmem [resolvable:$true] %s152_s8 }
  0x32   : > { %s693_s4 = scalar_lea.hbm %s978_s28, 256  ;;  %s698_s21 = scalar_lea.hbm %s1105_s1, 768 }
  0x33   : > { %p694_p6 = scmp.ne.s32.totalorder %s978_s28, %s693_s4  ;;  %p699_p12 = scmp.lt.u32.totalorder %s978_s28, %s1105_s1 }
  0x34   : > { %p700_p0 = scmp.lt.u32.totalorder %s698_s21, %s693_s4  ;;  %p702_p3 = scmp.lt.u32.totalorder %s693_s4, %s978_s28 }
  0x35   : > { %p696_p7 = pnand %p694_p6, %p665_p13 }
  0x36   : > { %p701_p2 = por %p700_p0, %p699_p12 }
  0x37   : > { %p697_p8 = pneg %p696_p7 }
  0x38   : > { %p703_p4 = por %p702_p3, %p701_p2 }
  0x3a   : > { %p704_p11 = pnand %p703_p4, %p697_p8 }
  0x3c   : > { %707 = shalt.err (!%p704_p11)
}
  0x3d   : > { %s708_s26 = scalar_lea.vmem %s988_s8, 256  ;;  %s829_s3 = smov [#allocation7]  }
  0x3e   : > { %p709_p1 = scmp.ne.s32.totalorder %s988_s8, %s708_s26  ;;  %s713_s27 = sshll.u32 %s829_s3, 4  ;;  %s714_s27 = int_to_ptr.vmem [resolvable:$false] %s713_s27 }
  0x3f   : > { %s715_s17 = scalar_lea.vmem %s714_s27, 512  ;;  %p716_p9 = scmp.lt.s32.totalorder %s988_s8, %s714_s27 }
  0x40   : > { %p711_p6 = pnand %p709_p1, %p665_p13  ;;  %p717_p12 = scmp.lt.s32.totalorder %s715_s17, %s708_s26 }
  0x42   : > { %p712_p7 = pneg %p711_p6  ;;  %p718_p0 = por %p717_p12, %p716_p9 }
  0x44   : > { %p719_p2 = pnand %p718_p0, %p712_p7 }
  0x46   : > { %722 = shalt.err (!%p719_p2)
}
  0x47   : > { %576 = dma.hbm_to_vmem [thread:$0]  (!%p934_p10), %s978_s28, 256, %s988_s8, %s143_s30, %s826_s7, %s827_s9, %s828_s20  }
  0x48   : > { %164 = sbr.rel (%p982_p5) target bundleno = 894 (0x37e), region = 28  ;;  %s166_s4 = sand.u32 (!%p982_p5), 1, %s799_s10  }
  0x49   : > { %s525_s6 = sshll.u32 (!%p982_p5), %s166_s4, 4  ;;  %s167_s21 = scalar_lea.sflag (!%p982_p5), [#allocation5], %s166_s4 }
  0x4a   : > { %s1022_s22 = scalar_lea.vmem (!%p982_p5), [#allocation4], %s525_s6  ;;  %p1114_p9 = scmp.ne.s32.totalorder (!%p982_p5), %s1110_s25, 0 }
  0x4f   : > { %782 = dma.done.wait (%p1114_p9), %s167_s21, 256  }
  0x50   : > { %784 = vsyncadd (%p1114_p9), %s167_s21, 4294967040  ;;  %s176_s24 = scalar_lea.sflag [#allocation8], %s166_s4  ;;  %s1028_s5 = scalar_lea.vmem [#allocation7], %s525_s6 }
  0x51   : > { %786 = dma.done.wait (%p1114_p9), %s176_s24, 256  }
  0x52   : > { %788 = vsyncadd (%p1114_p9), %s176_s24, 4294967040  ;;  %p200_p10 = scmp.eq.s32.totalorder %s811_s13, 0  ;;  %p201_p13 = scmp.eq.s32.totalorder %s807_s12, 0 }
  0x54   : > { %p202_p5 = pnand %p201_p13, %p200_p10 }
  0x55   : > { %vm206_vm0 = vcmask (!%p202_p5), 0   ;;  %v830_v0 = vmov (!%p202_p5), 0.0  }
  0x56   : > { %205 = sbr.rel (%p202_p5) target bundleno = 93 (0x5d), region = 40  ;;  %207 = vst.msk [vmem:[#allocation9] sm:$0x1] (!%p202_p5), %vm206_vm0, %v830_v0 }
  0x5d PF: > { %p527_p8 = scmp.ne.s32.totalorder %s807_s12, 0 }
  0x5e   : > { %vm211_vm1 = vcmask (!%p527_p8), 130048   ;;  %v831_v1 = vmov (!%p527_p8), 0.0  }
  0x5f   : > { %210 = sbr.rel (%p527_p8) target bundleno = 102 (0x66), region = 44  ;;  %212 = vst.msk [vmem:[#allocation2] sm:$0xff] (!%p527_p8), %vm211_vm1, %v831_v1  ;;  %213 = vst.msk [vmem:[#allocation3] sm:$0xff] (!%p527_p8), %vm211_vm1, %v831_v1 }
  0x66 PF: > { %v215_v2 = vld [vmem:[%s1022_s22] sm:$0xff]  ;;  %v216_v3 = vld [vmem:[%s1022_s22 + $0x8] sm:$0xff]  ;;  %v832_v5 = vmov 0.0|0.0   ;;  %s528_s25 = sshll.u32 %s811_s13, 3  ;;  %vm833_vm2 = vmmov 0   ;;  %v834_v9 = vmov 0.0  }
  0x67   : > { %v217_v4 = vld [vmem:[%s1028_s5] sm:$0xff]  ;;  %554 = vmatprep.subr.bf16.mxu0 %v832_v5  ;;  %557 = vmatprep.subr.bf16.mxu1 %v832_v5  ;;  %v555_v6 = vpack.c.bf16 %v216_v3, %v215_v2  ;;  %v218_v7 = vld [vmem:[%s1028_s5 + $0x8] sm:$0xff]  ;;  %s219_s7 = scalar_lea.vmem %s1022_s22, %s528_s25 [#allocation4]  ;;  %s221_s9 = scalar_lea.vmem %s1028_s5, %s528_s25 [#allocation7]  ;;  %vm295_vm3 = vcmask 130048  }
  0x68   : > { %v558_v8 = vpack.c.bf16 %v218_v7, %v217_v4  ;;  %544 = vmatprep.mubr.msk.f32.mxu0 %vm833_vm2, %v834_v9  ;;  %551 = vmatprep.mubr.msk.f32.mxu1 %vm833_vm2, %v834_v9  ;;  %v220_v10 = vld [vmem:[%s219_s7] sm:$0xff]  ;;  %v297_v13 = vld [vmem:[#allocation3] sm:$0xff]  ;;  %p529_p3 = scmp.ne.s32.totalorder %s807_s12, 2 }
  0x69   : > { %556 = vmatpush3.bf16.xpose.msra.mxu0 %v555_v6  ;;  %v222_v11 = vld [vmem:[%s221_s9] sm:$0xff]  ;;  %v416_v56 = vld [vmem:[#allocation9] sm:$0x1] (!%p529_p3)  ;;  %vm419_vm4 = vcmask (!%p529_p3), 0  }
  0x6a   : > { %559 = vmatpush3.bf16.xpose.msra.mxu1 %v558_v8  ;;  %v223_v12 = vld [vmem:[#allocation2] sm:$0xff] }
  0x70   : > { %545 = vmatmul.mubr.f32.vlgmr.msra.gmra.mrb[0].mxu0 %v220_v10 }
  0x71   : > { %552 = vmatmul.mubr.f32.vlgmr.msra.gmra.mrb[0].mxu1 %v222_v11 }
 0x141   : > { %373 = sbr.rel (%p529_p3) target bundleno = 869 (0x365), region = 48 }
 0x143   : > { %v290_v14 = vpop.f32.mrb[0].mxu0 }
 0x144   : > { %v294_v15 = vadd.f32 %v290_v14, %v223_v12  ;;  %v364_v16 = vpop.f32.mrb[0].mxu1  ;;  %v546_v17 = vpop.f32.mrb[1].mxu0 }
 0x145   : > { %v368_v18 = vadd.f32 %v364_v16, %v297_v13  ;;  %v553_v19 = vpop.f32.mrb[1].mxu1 }
 0x146   : > { %296 = vst.msk [vmem:[#allocation2] sm:$0xff] %vm295_vm3, %v294_v15 }
 0x147   : > { %369 = vst.msk [vmem:[#allocation3] sm:$0xff] %vm295_vm3, %v368_v18 }
 0x14d   : > { %v374_v20 = vld [vmem:[#allocation2] sm:$0xff] }
 0x14e   : > { %v376_v21 = vld [vmem:[#allocation3] sm:$0xff]  ;;  %v375_v22 = vmul.f32 0.25, %v374_v20 }
 0x14f   : > { %v377_v23 = vmul.f32 0.25, %v376_v21 }
 0x150   : > { %v378_v24 = vsel %vm295_vm3, %v375_v22, -inf }
 0x151   : > { %379 = vmax.xlane.f32.xlu0 %v378_v24  ;;  %v392_v25 = vsel %vm295_vm3, %v377_v23, -inf }
 0x155   : > { %393 = vmax.xlane.f32.xlu0 %v392_v25 }
 0x1de   : > { %v380_v26 = vpop.xlane.xlu0 %379 }
 0x1df   : > { %v381_v27 = vsub.f32 %v375_v22, %v380_v26 }
 0x1e1   : > { %v382_v28 = vmul.f32 1.442695, %v381_v27 }
 0x1e2   : > { %v394_v29 = vpop.xlane.xlu0 %393 }
 0x1e3   : > { %653 = vpow2.f32 %v382_v28  ;;  %v395_v30 = vsub.f32 %v377_v23, %v394_v29 }
 0x1e5   : > { %v396_v31 = vmul.f32 1.442695, %v395_v30 }
 0x1e7   : > { %655 = vpow2.f32 %v396_v31 }
 0x1ed   : > { %v654_v32 = vpop.eup %653 }
 0x1ee   : > { %v384_v33 = vsel %vm295_vm3, %v654_v32, 0.0 }
 0x1ef   : > { %385 = vadd.xlane.f32.xlu1 %v384_v33 }
 0x1f1   : > { %v656_v34 = vpop.eup %655 }
 0x1f2   : > { %v398_v35 = vsel %vm295_vm3, %v656_v34, 0.0 }
 0x1f3   : > { %399 = vadd.xlane.f32.xlu1 %v398_v35 }
 0x27c   : > { %v386_v36 = vpop.xlane.xlu1 %385 }
 0x27d   : > { %657 = vlog2.f32 %v386_v36 }
 0x280   : > { %v400_v37 = vpop.xlane.xlu1 %399 }
 0x281   : > { %659 = vlog2.f32 %v400_v37 }
 0x282   : > { %661 = vrcp.f32 %v386_v36 }
 0x287   : > { %v658_v38 = vpop.eup %657 }
 0x288   : > { %v388_v39 = vmul.f32 0.6931472, %v658_v38 }
 0x28a   : > { %v389_v44 = vsub.f32 %v381_v27, %v388_v39 }
 0x28b   : > { %v660_v40 = vpop.eup %659 }
 0x28c   : > { %v402_v41 = vmul.f32 0.6931472, %v660_v40  ;;  %v662_v42 = vpop.eup %661 }
 0x28d   : > { %v391_v45 = vmul.f32 %v662_v42, %v654_v32 }
 0x28e   : > { %v403_v43 = vsub.f32 %v395_v30, %v402_v41 }
 0x290   : > { %v404_v46 = vsub.f32 %v389_v44, %v403_v43 }
 0x292   : > { %v405_v47 = vmul.f32 %v404_v46, %v391_v45 }
 0x294   : > { %v406_v48 = vsel %vm295_vm3, %v405_v47, 0.0 }
 0x295   : > { %407 = vadd.xlane.f32.xlu0 %v406_v48 }
 0x322   : > { %v408_v49 = vpop.xlane.xlu0 %407 }
 0x323   : > { %v409_v50 = vrot.slane %v408_v49, 4 }
 0x325   : > { %v410_v51 = vadd.f32 %v409_v50, %v408_v49 }
 0x327   : > { %v411_v52 = vrot.slane %v410_v51, 2 }
 0x329   : > { %v412_v53 = vadd.f32 %v411_v52, %v410_v51 }
 0x32b   : > { %v413_v54 = vrot.slane %v412_v53, 1 }
 0x32d   : > { %v414_v55 = vadd.f32 %v413_v54, %v412_v53 }
 0x32f   : > { %560 = vpush %v414_v55 }
 0x360   : > { %s561_s12 = spop %560 }
 0x361   : > { %v417_v57 = vstv %s561_s12 }
 0x362   : > { %v418_v58 = vadd.f32 %v417_v57, %v416_v56 }
 0x364   : > { %420 = vst.msk [vmem:[#allocation9] sm:$0x1] %vm419_vm4, %v418_v58 }
 0x365 PF: > { %s1115_s13 = sadd.s32 4294967295, %s823_s16   ;;  %s835_s28 = smov [#allocation9]  }
 0x366   : > { %p1054_p4 = scmp.eq.s32.totalorder %s1115_s13, 5  ;;  %s428_s29 = sshll.u32 %s835_s28, 4  ;;  %s429_s29 = int_to_ptr.vmem [resolvable:$true] %s428_s29 }
 0x367   : > { %s723_s8 = scalar_lea.vmem %s429_s29, 16  ;;  %s729_s30 = scalar_lea.vmem %s429_s29, 32 }
 0x368   : > { %p724_p11 = scmp.ne.s32.totalorder %s429_s29, %s723_s8  ;;  %p730_p7 = scmp.lt.s32.totalorder %s429_s29, %s429_s29 }
 0x369   : > { %p731_p12 = scmp.lt.s32.totalorder %s729_s30, %s723_s8 }
 0x36a   : > { %p725_p1 = pnand %p724_p11, %p1054_p4 }
 0x36b   : > { %p732_p0 = por %p731_p12, %p730_p7 }
 0x36c   : > { %p726_p6 = pneg %p725_p1 }
 0x36e   : > { %p733_p2 = pnand %p732_p0, %p726_p6 }
 0x370   : > { %736 = shalt.err (!%p733_p2)
}
 0x371   : > { %s737_s27 = scalar_lea.hbm %s1106_s2, 16 }
 0x372   : > { %p738_p9 = scmp.ne.s32.totalorder %s1106_s2, %s737_s27  ;;  %p743_p5 = scmp.lt.u32.totalorder %s737_s27, %s1106_s2 }
 0x374   : > { %p739_p10 = pnand %p738_p9, %p1054_p4 }
 0x376   : > { %p740_p13 = pneg %p739_p10 }
 0x378   : > { %p745_p8 = pnand %p743_p5, %p740_p13 }
 0x37a   : > { %748 = shalt.err (!%p745_p8)
}
 0x37b   : > { %567 = dma.vmem_to_hbm [thread:$0]  (%p1054_p4), %s429_s29, 16, %s1106_s2, [#allocation6]  }
 0x37c   : > { %790 = dma.done.wait (%p1054_p4), [#allocation6], 16  }
 0x37d   : > { %792 = vsyncadd (%p1054_p4), [#allocation6], 4294967280 }
 0x37e PF: > { %s19_s16 = sadd.s32 1, %s823_s16   ;;  %s1117_s9 = smov %s799_s10 }
 0x37f   : > { %p16_p3 = scmp.ge.s32.totalorder %s19_s16, 8   ;;  %s1118_s10 = smov %s803_s11 }
 0x380   : > { %s1119_s11 = smov %s909_s23  ;;  %s1120_s12 = smov %s815_s14 }
 0x381   : > { %s1121_s13 = smov %s819_s15  ;;  %s1122_s14 = smov %s1125_s18 }
 0x382   : > { %s1123_s15 = smov %s1129_s19  ;;  %18 = sbr.rel (!%p16_p3) target bundleno = 8 (0x8), region = 92 }
 0x389   :  { %441 = vsyncpa [#allocation5], 1 }
 0x38a   :  { %443 = vsyncpa [#allocation5 + $0x1], 1 }
 0x38b   :  { %444 = vsyncpa [#allocation8], 1 }
 0x38c   :  { %446 = vsyncpa [#allocation8 + $0x1], 1 }
 0x38d   :  { %447 = vsyncpa [#allocation6], 1 }
 0x38e   :  { %449 = vsyncpa [#allocation6 + $0x1], 1 }

</bundles_post_ra>
